<compile_context>
chip_gen: v7x
topology: tpu7x:2x2x1
jax: 0.10.0
libtpu: 0.0.40
codegen_flags: <defaults>
</compile_context>

<pallas_src>
import functools

import numpy as np
import jax
import jax.numpy as jnp
from jax.experimental import pallas as pl
from jax.experimental.pallas import tpu as pltpu


# Conservative budgets so double-buffered in+out tiles fit scoped VMEM on
# v5e / v6e / v7x (v7x has only 64 MiB physical VMEM).
_VMEM_DATA_BUDGET = 16 * 1024 * 1024   # bytes of tile data (in+out, double-buffered)
_VMEM_LIMIT_BYTES = 32 * 1024 * 1024   # requested scoped-VMEM limit


def _log_softmax_kernel(x_ref, o_ref, *, axis):
    """log_softmax over `axis` of the current block, computed in f32."""
    x = x_ref[...].astype(jnp.float32)
    m = jnp.max(x, axis=axis, keepdims=True)
    # Fused finalize: o = x - (m + log(sum(exp(x - m)))) — no extra full-tile temp.
    lse = m + jnp.log(jnp.sum(jnp.exp(x - m), axis=axis, keepdims=True))
    o_ref[...] = (x - lse).astype(o_ref.dtype)


def log_softmax(x, dim=-1, dtype=jnp.float32):
    """Equivalent of torch.nn.functional.log_softmax(x, dim=dim, dtype=dtype)."""
    ndim = x.ndim
    dim = dim % ndim
    shape = x.shape
    out_dtype = jnp.dtype(dtype) if dtype is not None else x.dtype

    C = int(shape[dim])
    pre = int(np.prod(shape[:dim], dtype=np.int64)) if dim > 0 else 1
    post = int(np.prod(shape[dim + 1:], dtype=np.int64)) if dim < ndim - 1 else 1

    in_b = jnp.dtype(x.dtype).itemsize
    out_b = jnp.dtype(out_dtype).itemsize
    bytes_per_elem = 2 * (in_b + out_b)   # in + out tiles, double-buffered pipeline

    cost = pl.CostEstimate(
        flops=int(5 * x.size),
        transcendentals=int(2 * x.size),
        bytes_accessed=int(x.size * (in_b + out_b)),
    )
    cparams = lambda sem: pltpu.CompilerParams(
        dimension_semantics=sem, vmem_limit_bytes=_VMEM_LIMIT_BYTES)

    if post == 1:
        # Softmax over the contiguous last axis: view as (M, N), reduce over lanes.
        M, N = pre, C
        x2 = x.reshape(M, N)

        rows_budget = max(1, _VMEM_DATA_BUDGET // max(1, N * bytes_per_elem))
        # TODO(synk): streaming (two-pass) logsumexp when a single row exceeds VMEM.
        if rows_budget >= M:
            tm = M
            if M >= 1024:
                # Split into >= 2 row blocks so both TensorCores (v7x) get work.
                tm = min(M, -(-((M + 1) // 2) // 8) * 8)
        else:
            tm = max(8, (rows_budget // 8) * 8)

        out2 = pl.pallas_call(
            functools.partial(_log_softmax_kernel, axis=-1),
            out_shape=jax.ShapeDtypeStruct((M, N), out_dtype),
            grid_spec=pl.GridSpec(
                grid=(pl.cdiv(M, tm),),
                in_specs=[pl.BlockSpec((tm, N), lambda i: (i, 0))],
                out_specs=pl.BlockSpec((tm, N), lambda i: (i, 0)),
            ),
            compiler_params=cparams(("parallel",)),
            cost_estimate=cost,
        )(x2)
        return out2.reshape(shape)

    # Softmax over a non-last axis: pure reshape to (pre, C, post) — no transpose.
    # C rides the sublane axis of the block; the contiguous `post` dim stays on the
    # lane axis, so loads/stores are lane-dense (full 128-lane vst when post >= 128).
    x3 = x.reshape(pre, C, post)

    per_lane_bytes = max(1, C * bytes_per_elem)
    max_lanes = max(128, _VMEM_DATA_BUDGET // per_lane_bytes)
    # TODO(synk): streaming logsumexp if C alone exceeds the VMEM budget.
    if post <= max_lanes:
        tn = post                                  # full (== array dim, always legal)
        bp = max(1, min(pre, _VMEM_DATA_BUDGET // (per_lane_bytes * max(1, tn))))
        if bp >= pre and pre >= 2 and pre * C * post >= (1 << 20):
            bp = (pre + 1) // 2                    # keep >= 2 blocks for v7x megacore
    else:
        tn = max(128, min((max_lanes // 128) * 128, (post // 128) * 128))
        bp = 1

    out3 = pl.pallas_call(
        functools.partial(_log_softmax_kernel, axis=-2),
        out_shape=jax.ShapeDtypeStruct((pre, C, post), out_dtype),
        grid_spec=pl.GridSpec(
            grid=(pl.cdiv(pre, bp), pl.cdiv(post, tn)),
            in_specs=[pl.BlockSpec((bp, C, tn), lambda i, j: (i, 0, j))],
            out_specs=pl.BlockSpec((bp, C, tn), lambda i, j: (i, 0, j)),
        ),
        compiler_params=cparams(("parallel", "parallel")),
        cost_estimate=cost,
    )(x3)
    return out3.reshape(shape)


if __name__ == "__main__":
    key = jax.random.PRNGKey(0)
    # NCHW input, small shape consistent with the test module.
    x = jax.random.normal(key, (2, 4, 16, 16), dtype=jnp.float32)

    ok = True
    for dim in (1, -1, 0, 2):
        got = jax.block_until_ready(log_softmax(x, dim=dim, dtype=jnp.float32))
        want = jax.nn.log_softmax(x.astype(jnp.float32), axis=dim)
        if got.shape != want.shape or got.dtype != want.dtype:
            ok = False
        if not np.allclose(np.asarray(got), np.asarray(want), atol=1e-5, rtol=1e-5):
            ok = False

    print("KERNEL_OK" if ok else "KERNEL_MISMATCH")
</pallas_src>

<mosaic_0001>
module attributes {stable_mosaic.version = 11 : i64} {
  func.func @_log_softmax_kernel(%arg0: i32, %arg1: i32, %arg2: memref<2x4x256xf32, #tpu.memory_space<vmem>>, %arg3: memref<2x4x256xf32, #tpu.memory_space<vmem>>) attributes {dimension_semantics = [#tpu.dimension_semantics<parallel>, #tpu.dimension_semantics<parallel>], iteration_bounds = array<i64: 1, 1>, scalar_prefetch = 0 : i64, scratch_operands = 0 : i64, tpu.core_type = #tpu.core_type<tc>, window_params = [{transform_indices = @transform_0, window_bounds = array<i64: 2, 4, 256>}, {transform_indices = @transform_1, window_bounds = array<i64: 2, 4, 256>}]} {
    %c0 = arith.constant 0 : index
    %c0_0 = arith.constant 0 : index
    %c0_1 = arith.constant 0 : index
    %0 = vector.load %arg2[%c0, %c0_0, %c0_1] : memref<2x4x256xf32, #tpu.memory_space<vmem>>, vector<2x4x256xf32>
    %cst = arith.constant dense<0xFF800000> : vector<2x256xf32>
    %1 = vector.multi_reduction <maximumf>, %0, %cst [1] : vector<2x4x256xf32> to vector<2x256xf32>
    %2 = vector.shape_cast %1 : vector<2x256xf32> to vector<2x1x256xf32>
    %3 = vector.broadcast %2 : vector<2x1x256xf32> to vector<2x4x256xf32>
    %4 = arith.subf %0, %3 : vector<2x4x256xf32>
    %5 = math.exp %4 : vector<2x4x256xf32>
    %cst_2 = arith.constant dense<0.000000e+00> : vector<2x256xf32>
    %6 = vector.multi_reduction <add>, %5, %cst_2 [1] : vector<2x4x256xf32> to vector<2x256xf32>
    %7 = vector.shape_cast %6 : vector<2x256xf32> to vector<2x1x256xf32>
    %8 = math.log %7 : vector<2x1x256xf32>
    %9 = arith.addf %2, %8 : vector<2x1x256xf32>
    %10 = vector.broadcast %9 : vector<2x1x256xf32> to vector<2x4x256xf32>
    %11 = arith.subf %0, %10 : vector<2x4x256xf32>
    %c0_3 = arith.constant 0 : index
    %c0_4 = arith.constant 0 : index
    %c0_5 = arith.constant 0 : index
    %12 = vector.load %arg3[%c0_3, %c0_4, %c0_5] : memref<2x4x256xf32, #tpu.memory_space<vmem>>, vector<2x4x256xf32>
    tpu.vector_store %arg3[%c0_3, %c0_4, %c0_5], %11 {strides = array<i32>} : memref<2x4x256xf32, #tpu.memory_space<vmem>>, vector<2x4x256xf32>,
    return
  }
  func.func @transform_0(%arg0: i32, %arg1: i32) -> (i32, i32, i32) {
    %c0_i32 = arith.constant 0 : i32
    %c0_i32_0 = arith.constant 0 : i32
    return %arg0, %c0_i32, %arg1 : i32, i32, i32
  }
  func.func @transform_1(%arg0: i32, %arg1: i32) -> (i32, i32, i32) {
    %c0_i32 = arith.constant 0 : i32
    %c0_i32_0 = arith.constant 0 : i32
    return %arg0, %c0_i32, %arg1 : i32, i32, i32
  }
}

</mosaic_0001>

<bundles_post_ra>
// kernel: tpu_custom_call.1
= control target key start
LH: loop header
LB: loop body
LE: loop exit
PB: predicated region body
PF: predicated region fallthrough
CT: control target
= control target key end

     0   :  { %6 = vsyncpa [#allocation3], 0  ;;  %s281_s0 = inlined_call_operand.hbm [shape: f32[2,4,256], index: 0, kind: input, shape index: {}]   ;;  %s282_s1 = inlined_call_operand.hbm [shape: f32[2,4,256], index: 1, kind: output, shape index: {}]  }
   0x1   :  { %7 = vsyncpa [#allocation4], 0  ;;  %s215_s6 = smov [#allocation2]   ;;  %s167_s10 = scalar_lea.hbm %s281_s0, 256 }
   0x2   :  { %s13_s7 = sshll.u32 %s215_s6, 4  ;;  %p168_p0 = scmp.ne.s32.totalorder %s281_s0, %s167_s10  ;;  %s14_s7 = int_to_ptr.vmem [resolvable:$true] %s13_s7 }
   0x3   :  { %p171_p1 = scmp.lt.u32.totalorder %s167_s10, %s281_s0 }
   0x5   :  { %p173_p2 = pnand %p171_p1, %p168_p0 }
   0x7   :  { %176 = shalt.err (!%p173_p2)
}
   0x8   :  { %s177_s15 = scalar_lea.vmem %s14_s7, 256  ;;  %p182_p4 = scmp.lt.s32.totalorder %s14_s7, %s14_s7 }
   0x9   :  { %p178_p3 = scmp.ne.s32.totalorder %s14_s7, %s177_s15  ;;  %p183_p5 = scmp.lt.s32.totalorder %s177_s15, %s177_s15 }
   0xb   :  { %p184_p6 = por %p183_p5, %p182_p4 }
   0xd   :  { %p185_p7 = pnand %p184_p6, %p178_p3 }
   0xf   :  { %188 = shalt.err (!%p185_p7)
}
  0x10   :  { %s216_s16 = smov 128   ;;  %s217_s17 = smov 8  }
  0x11   :  { %19 = dma.hbm_to_vmem [thread:$0]  %s281_s0, 256, %s14_s7, [#allocation3], %s216_s16, %s216_s16, %s217_s17  }
  0x12   :  { %211 = dma.done.wait [#allocation3], 256  }
  0x13   :  { %212 = vsyncadd [#allocation3], 4294967040  ;;  %vm31_vm0 = vcmask 1043456   ;;  %v244_v0 = vld [vmem:[#allocation2] sm:$0xff]  ;;  %v246_v1 = vld [vmem:[#allocation2 + $0x8] sm:$0xff]  ;;  %s218_s0 = smov [#allocation5]  }
  0x14   :  { %v27_v2 = vcombine.high %v244_v0, %v244_v0  ;;  %v32_v3 = vsel %vm31_vm0, %v244_v0, -inf  ;;  %v28_v4 = vcombine.high %v246_v1, %v246_v1  ;;  %v46_v5 = vsel %vm31_vm0, %v246_v1, -inf  ;;  %s137_s20 = sshll.u32 %s218_s0, 4  ;;  %s138_s20 = int_to_ptr.vmem [resolvable:$true] %s137_s20 }
  0x15   :  { %v33_v6 = vrot.slane %v32_v3, 4  ;;  %v47_v7 = vrot.slane %v46_v5, 4  ;;  %s189_s21 = scalar_lea.vmem %s138_s20, 256  ;;  %p194_p9 = scmp.lt.s32.totalorder %s138_s20, %s138_s20 }
  0x16   :  { %v39_v8 = vsel %vm31_vm0, %v27_v2, -inf  ;;  %v53_v9 = vsel %vm31_vm0, %v28_v4, -inf  ;;  %p190_p8 = scmp.ne.s32.totalorder %s138_s20, %s189_s21  ;;  %p195_p10 = scmp.lt.s32.totalorder %s189_s21, %s189_s21 }
  0x17   :  { %v34_v10 = vmax.f32 %v32_v3, %v33_v6  ;;  %v40_v11 = vrot.slane %v39_v8, 4  ;;  %v48_v12 = vmax.f32 %v46_v5, %v47_v7  ;;  %v54_v13 = vrot.slane %v53_v9, 4 }
  0x18   :  { %p196_p11 = por %p195_p10, %p194_p9 }
  0x19   :  { %v35_v14 = vrot.slane %v34_v10, 2  ;;  %v41_v15 = vmax.f32 %v39_v8, %v40_v11  ;;  %v49_v16 = vrot.slane %v48_v12, 2  ;;  %v55_v17 = vmax.f32 %v53_v9, %v54_v13 }
  0x1a   :  { %p197_p12 = pnand %p196_p11, %p190_p8 }
  0x1b   :  { %v36_v18 = vmax.f32 %v34_v10, %v35_v14  ;;  %v42_v19 = vrot.slane %v41_v15, 2  ;;  %v50_v20 = vmax.f32 %v48_v12, %v49_v16  ;;  %v56_v21 = vrot.slane %v55_v17, 2 }
  0x1d   :  { %v37_v22 = vrot.slane %v36_v18, 1  ;;  %v43_v23 = vmax.f32 %v41_v15, %v42_v19  ;;  %v51_v24 = vrot.slane %v50_v20, 1  ;;  %v57_v25 = vmax.f32 %v55_v17, %v56_v21 }
  0x1f   :  { %v38_v26 = vmax.f32 %v36_v18, %v37_v22  ;;  %v44_v27 = vrot.slane %v43_v23, 1  ;;  %v52_v28 = vmax.f32 %v50_v20, %v51_v24  ;;  %v58_v29 = vrot.slane %v57_v25, 1 }
  0x21   :  { %v45_v30 = vmax.f32 %v43_v23, %v44_v27  ;;  %v59_v31 = vmax.f32 %v57_v25, %v58_v29 }
  0x23   :  { %v64_v32 = vcombine.low %v38_v26, %v45_v30  ;;  %v65_v33 = vcombine.low %v52_v28, %v59_v31 }
  0x25   :  { %v68_v34 = vsub.f32 %v244_v0, %v64_v32  ;;  %v69_v35 = vsub.f32 %v246_v1, %v65_v33 }
  0x27   :  { %v70_v36 = vmul.f32 1.442695, %v68_v34  ;;  %v72_v37 = vmul.f32 1.442695, %v69_v35 }
  0x29   :  { %155 = vpow2.f32 %v70_v36 }
  0x2a   :  { %157 = vpow2.f32 %v72_v37 }
  0x33   :  { %v156_v38 = vpop.eup %155 }
  0x34   :  { %v158_v39 = vpop.eup %157  ;;  %v76_v40 = vcombine.high %v156_v38, %v156_v38  ;;  %v80_v41 = vsel %vm31_vm0, %v156_v38, 0.0 }
  0x35   :  { %v81_v42 = vrot.slane %v80_v41, 4  ;;  %v77_v43 = vcombine.high %v158_v39, %v158_v39  ;;  %v94_v44 = vsel %vm31_vm0, %v158_v39, 0.0 }
  0x36   :  { %v87_v45 = vsel %vm31_vm0, %v76_v40, 0.0  ;;  %v95_v46 = vrot.slane %v94_v44, 4 }
  0x37   :  { %v82_v47 = vadd.f32 %v81_v42, %v80_v41  ;;  %v88_v48 = vrot.slane %v87_v45, 4  ;;  %v101_v49 = vsel %vm31_vm0, %v77_v43, 0.0 }
  0x38   :  { %v96_v50 = vadd.f32 %v95_v46, %v94_v44  ;;  %v102_v51 = vrot.slane %v101_v49, 4 }
  0x39   :  { %v83_v52 = vrot.slane %v82_v47, 2  ;;  %v89_v53 = vadd.f32 %v88_v48, %v87_v45 }
  0x3a   :  { %v97_v54 = vrot.slane %v96_v50, 2  ;;  %v103_v55 = vadd.f32 %v102_v51, %v101_v49 }
  0x3b   :  { %v84_v56 = vadd.f32 %v83_v52, %v82_v47  ;;  %v90_v57 = vrot.slane %v89_v53, 2 }
  0x3c   :  { %v98_v58 = vadd.f32 %v97_v54, %v96_v50  ;;  %v104_v59 = vrot.slane %v103_v55, 2 }
  0x3d   :  { %v85_v60 = vrot.slane %v84_v56, 1  ;;  %v91_v61 = vadd.f32 %v90_v57, %v89_v53 }
  0x3e   :  { %v99_v62 = vrot.slane %v98_v58, 1  ;;  %v105_v63 = vadd.f32 %v104_v59, %v103_v55 }
  0x3f   :  { %v86_v2 = vadd.f32 %v85_v60, %v84_v56  ;;  %v92_v3 = vrot.slane %v91_v61, 1 }
  0x40   :  { %v100_v4 = vadd.f32 %v99_v62, %v98_v58  ;;  %v106_v5 = vrot.slane %v105_v63, 1 }
  0x41   :  { %v93_v6 = vadd.f32 %v92_v3, %v91_v61  ;;  %159 = vlog2.f32 %v86_v2 }
  0x42   :  { %v107_v7 = vadd.f32 %v106_v5, %v105_v63  ;;  %161 = vlog2.f32 %v100_v4 }
  0x43   :  { %163 = vlog2.f32 %v93_v6 }
  0x44   :  { %165 = vlog2.f32 %v107_v7 }
  0x4b   :  { %v160_v8 = vpop.eup %159 }
  0x4c   :  { %v162_v9 = vpop.eup %161  ;;  %v109_v10 = vmul.f32 0.6931472, %v160_v8 }
  0x4d   :  { %v164_v11 = vpop.eup %163  ;;  %v113_v12 = vmul.f32 0.6931472, %v162_v9 }
  0x4e   :  { %v166_v13 = vpop.eup %165  ;;  %v111_v14 = vmul.f32 0.6931472, %v164_v11  ;;  %v116_v15 = vadd.f32 %v109_v10, %v38_v26 }
  0x4f   :  { %v115_v16 = vmul.f32 0.6931472, %v166_v13  ;;  %v118_v17 = vadd.f32 %v113_v12, %v52_v28 }
  0x50   :  { %v117_v18 = vadd.f32 %v111_v14, %v45_v30 }
  0x51   :  { %v119_v19 = vadd.f32 %v115_v16, %v59_v31 }
  0x52   :  { %v124_v20 = vcombine.low %v116_v15, %v117_v18 }
  0x53   :  { %v125_v21 = vcombine.low %v118_v17, %v119_v19 }
  0x54   :  { %v128_v22 = vsub.f32 %v244_v0, %v124_v20 }
  0x55   :  { %v129_v23 = vsub.f32 %v246_v1, %v125_v21 }
  0x56   :  { %130 = vst [vmem:[#allocation5] sm:$0xff] %v128_v22 }
  0x57   :  { %131 = vst [vmem:[#allocation5 + $0x8] sm:$0xff] %v129_v23 }
  0x58   :  { %200 = shalt.err (!%p197_p12)
}
  0x59   :  { %s201_s24 = scalar_lea.hbm %s282_s1, 256 }
  0x5a   :  { %p202_p13 = scmp.ne.s32.totalorder %s282_s1, %s201_s24  ;;  %p205_p0 = scmp.lt.u32.totalorder %s201_s24, %s282_s1 }
  0x5c   :  { %p207_p1 = pnand %p205_p0, %p202_p13 }
  0x5e   :  { %210 = shalt.err (!%p207_p1)
}
  0x5f   :  { %143 = dma.vmem_to_hbm [thread:$0]  %s138_s20, 256, %s282_s1, [#allocation4], %s216_s16, %s216_s16, %s217_s17  }
  0x60   :  { %213 = dma.done.wait [#allocation4], 256  }
  0x61   :  { %214 = vsyncadd [#allocation4], 4294967040 }
  0x62   :  { %147 = vsyncpa [#allocation3], 1 }
  0x63   :  { %148 = vsyncpa [#allocation4], 1 }

</bundles_post_ra>
